<compile_context>
chip_gen: v6e
topology: v6e:2x2x1
jax: 0.10.0
libtpu: 0.0.40
codegen_flags: <defaults>
</compile_context>

<pallas_src>
import jax
import jax.numpy as jnp
from jax.experimental import pallas as pl
from jax.experimental.pallas import tpu as pltpu


def _round_up(x, m):
    return ((x + m - 1) // m) * m


def _make_kernel(tile_bags, max_len, nbuf):
    """Kernel closure over static tile geometry."""
    TL = tile_bags * max_len  # token slots per bag tile

    def kernel(tok_ids_ref,                    # scalar prefetch (SMEM): (B_pad*L,) int32
               wpool_ref, fcw_ref, fcb_ref,    # VMEM inputs
               emb_hbm,                        # raw HBM ref (V, D), memory_space=pl.ANY
               out_ref,                        # VMEM output (TB, C_pad)
               rows_ref, sem):                 # scratch: (TL, D) rows, DMA sems (nbuf,)
        tile = pl.program_id(0)
        base = tile * TL                       # flat offset into tok_ids

        def issue(s, sem_idx):
            tok = tok_ids_ref[base + s]        # dynamic SMEM read (gather index)
            pltpu.make_async_copy(emb_hbm.at[pl.ds(tok, 1)],
                                  rows_ref.at[pl.ds(s, 1)],
                                  sem.at[sem_idx]).start()

        def wait(s, sem_idx):
            # Source index is irrelevant for wait; shapes/sem must match.
            pltpu.make_async_copy(emb_hbm.at[pl.ds(0, 1)],
                                  rows_ref.at[pl.ds(s, 1)],
                                  sem.at[sem_idx]).wait()

        # Prologue: put up to `nbuf` row-gather DMAs in flight.
        for s in range(min(nbuf, TL)):         # static, small
            issue(s, s % nbuf)

        # Steady state: wait row s, immediately refill the ring with row s+nbuf.
        @pl.loop(0, TL)
        def _(s):
            wait(s, s & (nbuf - 1))

            @pl.when(s + nbuf < TL)
            def _():
                issue(s + nbuf, s & (nbuf - 1))

        # Mean-pool all bags of the tile in one MXU matmul: (TB, TL) @ (TL, D).
        pooled = jnp.dot(wpool_ref[...], rows_ref[...],
                         preferred_element_type=jnp.float32)
        # Batched classifier head: (TB, D) @ (D, C_pad) + bias (lane-dense store).
        logits = jnp.dot(pooled, fcw_ref[...],
                         preferred_element_type=jnp.float32)
        out_ref[...] = logits + fcb_ref[...]

    return kernel


def text_classifier_forward(text, offsets, emb_w, fc_w, fc_b, *,
                            max_len=None, tile_bags=None, dma_depth=8):
    """text: (T,) int32 token ids, offsets: (B,) int32 (sorted bag starts),
    emb_w: (V, D), fc_w: (C, D) (PyTorch Linear layout), fc_b: (C,).
    Returns (B, C) float32 logits."""
    T = int(text.shape[0])
    B = int(offsets.shape[0])
    V, D = emb_w.shape
    C = fc_w.shape[0]
    C_pad = _round_up(C, 128)

    text = text.astype(jnp.int32)
    offsets = offsets.astype(jnp.int32)
    off_next = jnp.concatenate([offsets[1:], jnp.array([T], jnp.int32)])
    counts = (off_next - offsets).astype(jnp.int32)                  # (B,)

    if max_len is None:
        # Eager device->host sync; under jit pass max_len (or a bucket) statically.
        max_len = max(int(jnp.max(counts)), 1)
    L = int(max_len)

    if tile_bags is None:
        tile_bags = min(128, _round_up(B, 8))
        # Keep the per-tile pooling-matrix block (TB, TB*L) under ~4 MiB of VMEM.
        while tile_bags > 8 and tile_bags * tile_bags * L * 4 > 4 * 1024 * 1024:
            tile_bags -= 8
    TB = int(tile_bags)
    B_pad = _round_up(B, TB)
    TL = TB * L
    num_tiles = B_pad // TB
    NBUF = int(dma_depth)
    assert NBUF > 0 and (NBUF & (NBUF - 1)) == 0, "dma_depth must be a power of 2"

    # ---- host-side index plumbing (jit-friendly given static max_len) -------
    offsets_p = jnp.concatenate([offsets, jnp.full((B_pad - B,), T, jnp.int32)])
    counts_p = jnp.concatenate([counts, jnp.zeros((B_pad - B,), jnp.int32)])

    j_idx = jnp.arange(L, dtype=jnp.int32)[None, :]                  # (1, L)
    # Out-of-bag / padded-bag slots are clamped to a valid row; their pooling
    # weight is exactly zero, so the gathered value never affects the result.
    pos = jnp.clip(offsets_p[:, None] + j_idx, 0, max(T - 1, 0))     # (B_pad, L)
    tok_ids = text[pos].reshape(-1).astype(jnp.int32)                # (B_pad*L,) -> SMEM

    valid = j_idx < counts_p[:, None]                                # (B_pad, L)
    inv_cnt = jnp.where(counts_p > 0,
                        1.0 / jnp.maximum(counts_p, 1).astype(jnp.float32),
                        0.0)                                         # exact mean weight
    w_bag = jnp.where(valid, inv_cnt[:, None], 0.0).astype(jnp.float32)  # (B_pad, L)

    # Block-diagonal per-tile pooling matrix: W[b, lb*L + j] = w_bag[b, j]
    # iff lb == b % TB (bag's local index within its tile), else 0.
    lb = (jnp.arange(B_pad, dtype=jnp.int32) % TB)[:, None]          # (B_pad, 1)
    slot_lb = (jnp.arange(TL, dtype=jnp.int32) // L)[None, :]        # (1, TL)
    wpool = jnp.where(slot_lb == lb, jnp.tile(w_bag, (1, TB)), 0.0)  # (B_pad, TL) f32

    emb_f32 = emb_w.astype(jnp.float32)                              # (V, D) — no lane padding
    fcw_t = jnp.zeros((D, C_pad), jnp.float32).at[:, :C].set(fc_w.astype(jnp.float32).T)
    fcb_p = jnp.zeros((1, C_pad), jnp.float32).at[0, :C].set(fc_b.astype(jnp.float32))

    kernel = _make_kernel(TB, L, NBUF)

    grid_spec = pltpu.PrefetchScalarGridSpec(
        num_scalar_prefetch=1,
        grid=(num_tiles,),
        in_specs=[
            pl.BlockSpec((TB, TL), lambda i, ids: (i, 0)),           # pooling weights
            pl.BlockSpec((D, C_pad), lambda i, ids: (0, 0)),         # head weight (resident)
            pl.BlockSpec((1, C_pad), lambda i, ids: (0, 0)),         # bias (resident)
            pl.BlockSpec(memory_space=pl.ANY),                       # embedding table in HBM
        ],
        out_specs=pl.BlockSpec((TB, C_pad), lambda i, ids: (i, 0)),
        scratch_shapes=[
            pltpu.VMEM((TL, D), jnp.float32),                        # gathered rows
            pltpu.SemaphoreType.DMA((NBUF,)),                        # gather DMA ring
        ],
    )

    cost = pl.CostEstimate(
        flops=int(2 * B_pad * TL * D        # pooling GEMM
                  + 2 * B_pad * D * C_pad), # head GEMM
        transcendentals=0,
        bytes_accessed=int(B_pad * L * D * 4        # gathered embedding rows (f32)
                           + B_pad * TL * 4         # pooling weights
                           + D * C_pad * 4 + C_pad * 4
                           + B_pad * C_pad * 4      # output
                           + B_pad * L * 4),        # scalar-prefetched token ids
    )

    out = pl.pallas_call(
        kernel,
        out_shape=jax.ShapeDtypeStruct((B_pad, C_pad), jnp.float32),
        grid_spec=grid_spec,
        compiler_params=pltpu.CompilerParams(
            dimension_semantics=("parallel",)),      # megacore-shards bag tiles on v7x
        cost_estimate=cost,
    )(tok_ids, wpool, fcw_t, fcb_p, emb_f32)

    return out[:B, :C]


def _reference_forward(text, offsets, emb_w, fc_w, fc_b):
    """Pure-JAX reference mirroring nn.EmbeddingBag(mode='mean') + nn.Linear."""
    T = text.shape[0]
    off_next = jnp.concatenate([offsets[1:], jnp.array([T], dtype=offsets.dtype)])
    tok_emb = emb_w[text]                                       # (T, D)
    t_idx = jnp.arange(T)[None, :]
    mask = ((t_idx >= offsets[:, None]) & (t_idx < off_next[:, None])).astype(jnp.float32)
    counts = jnp.maximum(mask.sum(axis=1, keepdims=True), 1.0)
    embedded = (mask / counts) @ tok_emb                        # (B, D)
    return embedded @ fc_w.T + fc_b[None, :]


if __name__ == "__main__":
    # Small, deterministic setup consistent with the module.
    vocab_size, embed_dim, num_class = 64, 32, 8
    bag_lengths = [5, 7, 3, 9]                 # 4 bags, 24 tokens total
    T = sum(bag_lengths)
    B = len(bag_lengths)

    key = jax.random.PRNGKey(0)
    k_emb, k_fcw, k_text = jax.random.split(key, 3)

    initrange = 0.5
    emb_w = jax.random.uniform(k_emb, (vocab_size, embed_dim),
                               minval=-initrange, maxval=initrange, dtype=jnp.float32)
    fc_w = jax.random.uniform(k_fcw, (num_class, embed_dim),
                              minval=-initrange, maxval=initrange, dtype=jnp.float32)
    fc_b = jnp.zeros((num_class,), dtype=jnp.float32)

    text = jax.random.randint(k_text, (T,), 0, vocab_size, dtype=jnp.int32)
    offsets = jnp.array([0] + list(jnp.cumsum(jnp.array(bag_lengths))[:-1]),
                        dtype=jnp.int32)

    out = text_classifier_forward(text, offsets, emb_w, fc_w, fc_b)
    out = jax.block_until_ready(out)

    ref = _reference_forward(text, offsets, emb_w, fc_w, fc_b)
    assert out.shape == (B, num_class)
    assert jnp.allclose(out, ref, atol=2e-2, rtol=2e-2), (
        f"mismatch vs reference, max abs err = {float(jnp.max(jnp.abs(out - ref)))}")

    print("KERNEL_OK")
</pallas_src>

<mosaic_0001>
module attributes {stable_mosaic.version = 11 : i64} {
  func.func @kernel(%arg0: i32, %arg1: memref<72xi32, #tpu.memory_space<smem>>, %arg2: memref<8x72xf32, #tpu.memory_space<vmem>>, %arg3: memref<32x128xf32, #tpu.memory_space<vmem>>, %arg4: memref<1x128xf32, #tpu.memory_space<vmem>>, %arg5: memref<64x32xf32, #tpu.memory_space<any>>, %arg6: memref<8x128xf32, #tpu.memory_space<vmem>>, %arg7: memref<72x32xf32, #tpu.memory_space<vmem>>, %arg8: memref<8x!tpu.dma_semaphore, #tpu.memory_space<semaphore_mem>>) attributes {dimension_semantics = [#tpu.dimension_semantics<parallel>], iteration_bounds = array<i64: 1>, scalar_prefetch = 1 : i64, scratch_operands = 2 : i64, tpu.core_type = #tpu.core_type<tc>, window_params = [{transform_indices = @transform_0, window_bounds = array<i64: 8, 72>}, {pipeline_mode = #tpu.pipeline_mode<synchronous>, transform_indices = @transform_1, window_bounds = array<i64: 32, 128>}, {pipeline_mode = #tpu.pipeline_mode<synchronous>, transform_indices = @transform_2, window_bounds = array<i64: 1, 128>}, {}, {transform_indices = @transform_4, window_bounds = array<i64: 8, 128>}]} {
    %c72_i32 = arith.constant 72 : i32
    %0 = arith.muli %arg0, %c72_i32 : i32
    %c0_i32 = arith.constant 0 : i32
    %1 = arith.addi %0, %c0_i32 : i32
    %2 = arith.index_cast %1 : i32 to index
    %3 = memref.load %arg1[%2] : memref<72xi32, #tpu.memory_space<smem>>
    %c0_i32_0 = arith.constant 0 : i32
    %c0_i32_1 = arith.constant 0 : i32
    %4 = tpu.memref_slice %arg5[%3, %c0_i32_1] : memref<64x32xf32, #tpu.memory_space<any>> -> memref<1x32xf32, #tpu.memory_space<any>>
    %c0_i32_2 = arith.constant 0 : i32
    %c0_i32_3 = arith.constant 0 : i32
    %5 = tpu.memref_slice %arg7[%c0_i32_2, %c0_i32_3] : memref<72x32xf32, #tpu.memory_space<vmem>> -> memref<1x32xf32, #tpu.memory_space<vmem>>
    %6 = tpu.memref_slice %arg8[%c0_i32_0] : memref<8x!tpu.dma_semaphore, #tpu.memory_space<semaphore_mem>> -> memref<1x!tpu.dma_semaphore, #tpu.memory_space<semaphore_mem>>
    %7 = tpu.memref_squeeze %6 : memref<1x!tpu.dma_semaphore, #tpu.memory_space<semaphore_mem>> -> memref<!tpu.dma_semaphore, #tpu.memory_space<semaphore_mem>>
    tpu.enqueue_dma source(%4 : memref<1x32xf32, #tpu.memory_space<any>>) target(%5 : memref<1x32xf32, #tpu.memory_space<vmem>>) target_semaphore(%7 : memref<!tpu.dma_semaphore, #tpu.memory_space<semaphore_mem>>)
    %c1_i32 = arith.constant 1 : i32
    %8 = arith.addi %0, %c1_i32 : i32
    %9 = arith.index_cast %8 : i32 to index
    %10 = memref.load %arg1[%9] : memref<72xi32, #tpu.memory_space<smem>>
    %c1_i32_4 = arith.constant 1 : i32
    %c0_i32_5 = arith.constant 0 : i32
    %11 = tpu.memref_slice %arg5[%10, %c0_i32_5] : memref<64x32xf32, #tpu.memory_space<any>> -> memref<1x32xf32, #tpu.memory_space<any>>
    %c1_i32_6 = arith.constant 1 : i32
    %c0_i32_7 = arith.constant 0 : i32
    %12 = tpu.memref_slice %arg7[%c1_i32_6, %c0_i32_7] : memref<72x32xf32, #tpu.memory_space<vmem>> -> memref<1x32xf32, #tpu.memory_space<vmem>>
    %13 = tpu.memref_slice %arg8[%c1_i32_4] : memref<8x!tpu.dma_semaphore, #tpu.memory_space<semaphore_mem>> -> memref<1x!tpu.dma_semaphore, #tpu.memory_space<semaphore_mem>>
    %14 = tpu.memref_squeeze %13 : memref<1x!tpu.dma_semaphore, #tpu.memory_space<semaphore_mem>> -> memref<!tpu.dma_semaphore, #tpu.memory_space<semaphore_mem>>
    tpu.enqueue_dma source(%11 : memref<1x32xf32, #tpu.memory_space<any>>) target(%12 : memref<1x32xf32, #tpu.memory_space<vmem>>) target_semaphore(%14 : memref<!tpu.dma_semaphore, #tpu.memory_space<semaphore_mem>>)
    %c2_i32 = arith.constant 2 : i32
    %15 = arith.addi %0, %c2_i32 : i32
    %16 = arith.index_cast %15 : i32 to index
    %17 = memref.load %arg1[%16] : memref<72xi32, #tpu.memory_space<smem>>
    %c2_i32_8 = arith.constant 2 : i32
    %c0_i32_9 = arith.constant 0 : i32
    %18 = tpu.memref_slice %arg5[%17, %c0_i32_9] : memref<64x32xf32, #tpu.memory_space<any>> -> memref<1x32xf32, #tpu.memory_space<any>>
    %c2_i32_10 = arith.constant 2 : i32
    %c0_i32_11 = arith.constant 0 : i32
    %19 = tpu.memref_slice %arg7[%c2_i32_10, %c0_i32_11] : memref<72x32xf32, #tpu.memory_space<vmem>> -> memref<1x32xf32, #tpu.memory_space<vmem>>
    %20 = tpu.memref_slice %arg8[%c2_i32_8] : memref<8x!tpu.dma_semaphore, #tpu.memory_space<semaphore_mem>> -> memref<1x!tpu.dma_semaphore, #tpu.memory_space<semaphore_mem>>
    %21 = tpu.memref_squeeze %20 : memref<1x!tpu.dma_semaphore, #tpu.memory_space<semaphore_mem>> -> memref<!tpu.dma_semaphore, #tpu.memory_space<semaphore_mem>>
    tpu.enqueue_dma source(%18 : memref<1x32xf32, #tpu.memory_space<any>>) target(%19 : memref<1x32xf32, #tpu.memory_space<vmem>>) target_semaphore(%21 : memref<!tpu.dma_semaphore, #tpu.memory_space<semaphore_mem>>)
    %c3_i32 = arith.constant 3 : i32
    %22 = arith.addi %0, %c3_i32 : i32
    %23 = arith.index_cast %22 : i32 to index
    %24 = memref.load %arg1[%23] : memref<72xi32, #tpu.memory_space<smem>>
    %c3_i32_12 = arith.constant 3 : i32
    %c0_i32_13 = arith.constant 0 : i32
    %25 = tpu.memref_slice %arg5[%24, %c0_i32_13] : memref<64x32xf32, #tpu.memory_space<any>> -> memref<1x32xf32, #tpu.memory_space<any>>
    %c3_i32_14 = arith.constant 3 : i32
    %c0_i32_15 = arith.constant 0 : i32
    %26 = tpu.memref_slice %arg7[%c3_i32_14, %c0_i32_15] : memref<72x32xf32, #tpu.memory_space<vmem>> -> memref<1x32xf32, #tpu.memory_space<vmem>>
    %27 = tpu.memref_slice %arg8[%c3_i32_12] : memref<8x!tpu.dma_semaphore, #tpu.memory_space<semaphore_mem>> -> memref<1x!tpu.dma_semaphore, #tpu.memory_space<semaphore_mem>>
    %28 = tpu.memref_squeeze %27 : memref<1x!tpu.dma_semaphore, #tpu.memory_space<semaphore_mem>> -> memref<!tpu.dma_semaphore, #tpu.memory_space<semaphore_mem>>
    tpu.enqueue_dma source(%25 : memref<1x32xf32, #tpu.memory_space<any>>) target(%26 : memref<1x32xf32, #tpu.memory_space<vmem>>) target_semaphore(%28 : memref<!tpu.dma_semaphore, #tpu.memory_space<semaphore_mem>>)
    %c4_i32 = arith.constant 4 : i32
    %29 = arith.addi %0, %c4_i32 : i32
    %30 = arith.index_cast %29 : i32 to index
    %31 = memref.load %arg1[%30] : memref<72xi32, #tpu.memory_space<smem>>
    %c4_i32_16 = arith.constant 4 : i32
    %c0_i32_17 = arith.constant 0 : i32
    %32 = tpu.memref_slice %arg5[%31, %c0_i32_17] : memref<64x32xf32, #tpu.memory_space<any>> -> memref<1x32xf32, #tpu.memory_space<any>>
    %c4_i32_18 = arith.constant 4 : i32
    %c0_i32_19 = arith.constant 0 : i32
    %33 = tpu.memref_slice %arg7[%c4_i32_18, %c0_i32_19] : memref<72x32xf32, #tpu.memory_space<vmem>> -> memref<1x32xf32, #tpu.memory_space<vmem>>
    %34 = tpu.memref_slice %arg8[%c4_i32_16] : memref<8x!tpu.dma_semaphore, #tpu.memory_space<semaphore_mem>> -> memref<1x!tpu.dma_semaphore, #tpu.memory_space<semaphore_mem>>
    %35 = tpu.memref_squeeze %34 : memref<1x!tpu.dma_semaphore, #tpu.memory_space<semaphore_mem>> -> memref<!tpu.dma_semaphore, #tpu.memory_space<semaphore_mem>>
    tpu.enqueue_dma source(%32 : memref<1x32xf32, #tpu.memory_space<any>>) target(%33 : memref<1x32xf32, #tpu.memory_space<vmem>>) target_semaphore(%35 : memref<!tpu.dma_semaphore, #tpu.memory_space<semaphore_mem>>)
    %c5_i32 = arith.constant 5 : i32
    %36 = arith.addi %0, %c5_i32 : i32
    %37 = arith.index_cast %36 : i32 to index
    %38 = memref.load %arg1[%37] : memref<72xi32, #tpu.memory_space<smem>>
    %c5_i32_20 = arith.constant 5 : i32
    %c0_i32_21 = arith.constant 0 : i32
    %39 = tpu.memref_slice %arg5[%38, %c0_i32_21] : memref<64x32xf32, #tpu.memory_space<any>> -> memref<1x32xf32, #tpu.memory_space<any>>
    %c5_i32_22 = arith.constant 5 : i32
    %c0_i32_23 = arith.constant 0 : i32
    %40 = tpu.memref_slice %arg7[%c5_i32_22, %c0_i32_23] : memref<72x32xf32, #tpu.memory_space<vmem>> -> memref<1x32xf32, #tpu.memory_space<vmem>>
    %41 = tpu.memref_slice %arg8[%c5_i32_20] : memref<8x!tpu.dma_semaphore, #tpu.memory_space<semaphore_mem>> -> memref<1x!tpu.dma_semaphore, #tpu.memory_space<semaphore_mem>>
    %42 = tpu.memref_squeeze %41 : memref<1x!tpu.dma_semaphore, #tpu.memory_space<semaphore_mem>> -> memref<!tpu.dma_semaphore, #tpu.memory_space<semaphore_mem>>
    tpu.enqueue_dma source(%39 : memref<1x32xf32, #tpu.memory_space<any>>) target(%40 : memref<1x32xf32, #tpu.memory_space<vmem>>) target_semaphore(%42 : memref<!tpu.dma_semaphore, #tpu.memory_space<semaphore_mem>>)
    %c6_i32 = arith.constant 6 : i32
    %43 = arith.addi %0, %c6_i32 : i32
    %44 = arith.index_cast %43 : i32 to index
    %45 = memref.load %arg1[%44] : memref<72xi32, #tpu.memory_space<smem>>
    %c6_i32_24 = arith.constant 6 : i32
    %c0_i32_25 = arith.constant 0 : i32
    %46 = tpu.memref_slice %arg5[%45, %c0_i32_25] : memref<64x32xf32, #tpu.memory_space<any>> -> memref<1x32xf32, #tpu.memory_space<any>>
    %c6_i32_26 = arith.constant 6 : i32
    %c0_i32_27 = arith.constant 0 : i32
    %47 = tpu.memref_slice %arg7[%c6_i32_26, %c0_i32_27] : memref<72x32xf32, #tpu.memory_space<vmem>> -> memref<1x32xf32, #tpu.memory_space<vmem>>
    %48 = tpu.memref_slice %arg8[%c6_i32_24] : memref<8x!tpu.dma_semaphore, #tpu.memory_space<semaphore_mem>> -> memref<1x!tpu.dma_semaphore, #tpu.memory_space<semaphore_mem>>
    %49 = tpu.memref_squeeze %48 : memref<1x!tpu.dma_semaphore, #tpu.memory_space<semaphore_mem>> -> memref<!tpu.dma_semaphore, #tpu.memory_space<semaphore_mem>>
    tpu.enqueue_dma source(%46 : memref<1x32xf32, #tpu.memory_space<any>>) target(%47 : memref<1x32xf32, #tpu.memory_space<vmem>>) target_semaphore(%49 : memref<!tpu.dma_semaphore, #tpu.memory_space<semaphore_mem>>)
    %c7_i32 = arith.constant 7 : i32
    %50 = arith.addi %0, %c7_i32 : i32
    %51 = arith.index_cast %50 : i32 to index
    %52 = memref.load %arg1[%51] : memref<72xi32, #tpu.memory_space<smem>>
    %c7_i32_28 = arith.constant 7 : i32
    %c0_i32_29 = arith.constant 0 : i32
    %53 = tpu.memref_slice %arg5[%52, %c0_i32_29] : memref<64x32xf32, #tpu.memory_space<any>> -> memref<1x32xf32, #tpu.memory_space<any>>
    %c7_i32_30 = arith.constant 7 : i32
    %c0_i32_31 = arith.constant 0 : i32
    %54 = tpu.memref_slice %arg7[%c7_i32_30, %c0_i32_31] : memref<72x32xf32, #tpu.memory_space<vmem>> -> memref<1x32xf32, #tpu.memory_space<vmem>>
    %55 = tpu.memref_slice %arg8[%c7_i32_28] : memref<8x!tpu.dma_semaphore, #tpu.memory_space<semaphore_mem>> -> memref<1x!tpu.dma_semaphore, #tpu.memory_space<semaphore_mem>>
    %56 = tpu.memref_squeeze %55 : memref<1x!tpu.dma_semaphore, #tpu.memory_space<semaphore_mem>> -> memref<!tpu.dma_semaphore, #tpu.memory_space<semaphore_mem>>
    tpu.enqueue_dma source(%53 : memref<1x32xf32, #tpu.memory_space<any>>) target(%54 : memref<1x32xf32, #tpu.memory_space<vmem>>) target_semaphore(%56 : memref<!tpu.dma_semaphore, #tpu.memory_space<semaphore_mem>>)
    %c0_i32_32 = arith.constant 0 : i32
    %c72_i32_33 = arith.constant 72 : i32
    %57 = arith.addi %c0_i32_32, %c72_i32_33 : i32
    %c1_i32_34 = arith.constant 1 : i32
    scf.for %arg9 = %c0_i32_32 to %57 step %c1_i32_34  : i32 {
      %c1_i32_46 = arith.constant 1 : i32
      %67 = arith.muli %arg9, %c1_i32_46 : i32
      %c0_i32_47 = arith.constant 0 : i32
      %68 = arith.addi %c0_i32_47, %67 : i32
      %c7_i32_48 = arith.constant 7 : i32
      %69 = arith.andi %68, %c7_i32_48 : i32
      %c0_i32_49 = arith.constant 0 : i32
      %c0_i32_50 = arith.constant 0 : i32
      %70 = tpu.memref_slice %arg5[%c0_i32_49, %c0_i32_50] : memref<64x32xf32, #tpu.memory_space<any>> -> memref<1x32xf32, #tpu.memory_space<any>>
      %c0_i32_51 = arith.constant 0 : i32
      %71 = tpu.memref_slice %arg7[%68, %c0_i32_51] : memref<72x32xf32, #tpu.memory_space<vmem>> -> memref<1x32xf32, #tpu.memory_space<vmem>>
      %72 = tpu.memref_slice %arg8[%69] : memref<8x!tpu.dma_semaphore, #tpu.memory_space<semaphore_mem>> -> memref<1x!tpu.dma_semaphore, #tpu.memory_space<semaphore_mem>>
      %73 = tpu.memref_squeeze %72 : memref<1x!tpu.dma_semaphore, #tpu.memory_space<semaphore_mem>> -> memref<!tpu.dma_semaphore, #tpu.memory_space<semaphore_mem>>
      tpu.wait_dma2 semaphore(%73 : memref<!tpu.dma_semaphore, #tpu.memory_space<semaphore_mem>>) src(%70 : memref<1x32xf32, #tpu.memory_space<any>>) dst(%71 : memref<1x32xf32, #tpu.memory_space<vmem>>)
      %c8_i32 = arith.constant 8 : i32
      %74 = arith.addi %68, %c8_i32 : i32
      %c72_i32_52 = arith.constant 72 : i32
      %75 = arith.cmpi slt, %74, %c72_i32_52 : i32
      %76 = arith.extui %75 : i1 to i32
      %c0_i32_53 = arith.constant 0 : i32
      %77 = arith.cmpi ne, %76, %c0_i32_53 : i32
      scf.if %77 {
        %c8_i32_54 = arith.constant 8 : i32
        %78 = arith.addi %68, %c8_i32_54 : i32
        %c7_i32_55 = arith.constant 7 : i32
        %79 = arith.andi %68, %c7_i32_55 : i32
        %80 = arith.addi %0, %78 : i32
        %81 = arith.index_cast %80 : i32 to index
        %82 = memref.load %arg1[%81] : memref<72xi32, #tpu.memory_space<smem>>
        %c0_i32_56 = arith.constant 0 : i32
        %83 = tpu.memref_slice %arg5[%82, %c0_i32_56] : memref<64x32xf32, #tpu.memory_space<any>> -> memref<1x32xf32, #tpu.memory_space<any>>
        %c0_i32_57 = arith.constant 0 : i32
        %84 = tpu.memref_slice %arg7[%78, %c0_i32_57] : memref<72x32xf32, #tpu.memory_space<vmem>> -> memref<1x32xf32, #tpu.memory_space<vmem>>
        %85 = tpu.memref_slice %arg8[%79] : memref<8x!tpu.dma_semaphore, #tpu.memory_space<semaphore_mem>> -> memref<1x!tpu.dma_semaphore, #tpu.memory_space<semaphore_mem>>
        %86 = tpu.memref_squeeze %85 : memref<1x!tpu.dma_semaphore, #tpu.memory_space<semaphore_mem>> -> memref<!tpu.dma_semaphore, #tpu.memory_space<semaphore_mem>>
        tpu.enqueue_dma source(%83 : memref<1x32xf32, #tpu.memory_space<any>>) target(%84 : memref<1x32xf32, #tpu.memory_space<vmem>>) target_semaphore(%86 : memref<!tpu.dma_semaphore, #tpu.memory_space<semaphore_mem>>)
      } else {
      }
    }
    %c72_i32_35 = arith.constant 72 : i32
    %c0 = arith.constant 0 : index
    %c0_36 = arith.constant 0 : index
    %58 = vector.load %arg2[%c0, %c0_36] : memref<8x72xf32, #tpu.memory_space<vmem>>, vector<8x72xf32>
    %c0_37 = arith.constant 0 : index
    %c0_38 = arith.constant 0 : index
    %59 = vector.load %arg7[%c0_37, %c0_38] : memref<72x32xf32, #tpu.memory_space<vmem>>, vector<72x32xf32>
    %cst = arith.constant dense<0.000000e+00> : vector<8x32xf32>
    %60 = tpu.matmul %58, %59, %cst {dimension_numbers = #tpu.dot_dimension_numbers<[1], [0], [0], [1], [0, 0, 1, 1], [], []>} : vector<8x72xf32>, vector<72x32xf32>, vector<8x32xf32> -> vector<8x32xf32>
    %c0_39 = arith.constant 0 : index
    %c0_40 = arith.constant 0 : index
    %61 = vector.load %arg3[%c0_39, %c0_40] : memref<32x128xf32, #tpu.memory_space<vmem>>, vector<32x128xf32>
    %cst_41 = arith.constant dense<0.000000e+00> : vector<8x128xf32>
    %62 = tpu.matmul %60, %61, %cst_41 {dimension_numbers = #tpu.dot_dimension_numbers<[1], [0], [0], [1], [0, 0, 1, 1], [], []>} : vector<8x32xf32>, vector<32x128xf32>, vector<8x128xf32> -> vector<8x128xf32>
    %c0_42 = arith.constant 0 : index
    %c0_43 = arith.constant 0 : index
    %63 = vector.load %arg4[%c0_42, %c0_43] : memref<1x128xf32, #tpu.memory_space<vmem>>, vector<1x128xf32>
    %64 = vector.broadcast %63 : vector<1x128xf32> to vector<8x128xf32>
    %65 = arith.addf %62, %64 : vector<8x128xf32>
    %c0_44 = arith.constant 0 : index
    %c0_45 = arith.constant 0 : index
    %66 = vector.load %arg6[%c0_44, %c0_45] : memref<8x128xf32, #tpu.memory_space<vmem>>, vector<8x128xf32>
    tpu.vector_store %arg6[%c0_44, %c0_45], %65 {strides = array<i32>} : memref<8x128xf32, #tpu.memory_space<vmem>>, vector<8x128xf32>,
    return
  }
  func.func @transform_0(%arg0: i32, %arg1: memref<72xi32, #tpu.memory_space<smem>>) -> (i32, i32) {
    %c0_i32 = arith.constant 0 : i32
    %c0_i32_0 = arith.constant 0 : i32
    return %arg0, %c0_i32 : i32, i32
  }
  func.func @transform_1(%arg0: i32, %arg1: memref<72xi32, #tpu.memory_space<smem>>) -> (i32, i32) {
    %c0_i32 = arith.constant 0 : i32
    %c0_i32_0 = arith.constant 0 : i32
    %c0_i32_1 = arith.constant 0 : i32
    return %c0_i32, %c0_i32_0 : i32, i32
  }
  func.func @transform_2(%arg0: i32, %arg1: memref<72xi32, #tpu.memory_space<smem>>) -> (i32, i32) {
    %c0_i32 = arith.constant 0 : i32
    %c0_i32_0 = arith.constant 0 : i32
    %c0_i32_1 = arith.constant 0 : i32
    return %c0_i32, %c0_i32_0 : i32, i32
  }
  func.func @transform_4(%arg0: i32, %arg1: memref<72xi32, #tpu.memory_space<smem>>) -> (i32, i32) {
    %c0_i32 = arith.constant 0 : i32
    %c0_i32_0 = arith.constant 0 : i32
    return %arg0, %c0_i32 : i32, i32
  }
}

</mosaic_0001>

<bundles_post_ra>
// kernel: tpu_custom_call.1
= control target key start
LH: loop header
LB: loop body
LE: loop exit
PB: predicated region body
PF: predicated region fallthrough
CT: control target
= control target key end

     0   :  { %s1060_s0 = inlined_call_operand.vmem [shape: s32[72], index: 0, kind: input, shape index: {}]   ;;  %s1061_s1 = inlined_call_operand.vmem [shape: f32[8,72], index: 1, kind: input, shape index: {}]   ;;  %s1062_s2 = inlined_call_operand.vmem [shape: f32[32,128], index: 2, kind: input, shape index: {}]   ;;  %s1063_s3 = inlined_call_operand.vmem [shape: f32[1,128], index: 3, kind: input, shape index: {}]   ;;  %s1064_s4 = inlined_call_operand.vmem [shape: f32[64,32], index: 4, kind: input, shape index: {}]   ;;  %s1065_s5 = inlined_call_operand.hbm [shape: f32[8,128], index: 5, kind: output, shape index: {}]  }
   0x1   :  { %s10_s20 = sshll.u32 %s1060_s0, 4  ;;  %s11_s20 = int_to_ptr.vmem [resolvable:$true] %s10_s20 }
   0x2   :  { %s929_s21 = scalar_lea.vmem %s11_s20, 16  ;;  %p934_p1 = scmp.lt.s32.totalorder %s11_s20, %s11_s20 }
   0x3   :  { %p930_p0 = scmp.ne.s32.totalorder %s11_s20, %s929_s21  ;;  %p935_p2 = scmp.lt.s32.totalorder %s929_s21, %s929_s21 }
   0x5   :  { %p936_p3 = por %p935_p2, %p934_p1 }
   0x7   :  { %p937_p4 = pnand %p936_p3, %p930_p0 }
   0x9   :  { %940 = shalt.err (!%p937_p4)  }
   0xa   :  { %s975_s22 = smov [#allocation5]  }
   0xb   :  { %13 = dma.vmem_to_smem %s11_s20, 16, %s975_s22, [#allocation4] }
   0xc   :  { %965 = dma.done.wait [#allocation4], 16 }
   0xd   :  { %966 = vsyncadd [#allocation4], 4294967280 }
   0xe   :  { %15 = sfence }
   0xf   :  { %16 = vsyncpa [#allocation7], 0  ;;  %s24_s23 = sld [smem:[#allocation5]] }
  0x15   :  { %s25_s26 = scalar_lea.vmem %s1064_s4, %s24_s23 }
  0x16   :  { %v44_v0 = vld [vmem:[%s25_s26] sm:$0x1] }
  0x17   :  { %45 = vst [vmem:[#allocation2] sm:$0x1] %v44_v0 }
  0x18   :  { %71 = vsyncadd [#allocation3], 16  ;;  %s849_s0 = sld [smem:[#allocation5 + $0x1]] }
  0x1e   :  { %s74_s29 = scalar_lea.vmem %s1064_s4, %s849_s0 }
  0x1f   :  { %v95_v1 = vld [vmem:[%s74_s29] sm:$0x1] }
  0x20   :  { %96 = vst [vmem:[#allocation2 + $0x1] sm:$0x1] %v95_v1 }
  0x21   :  { %122 = vsyncadd [#allocation3 + $0x1], 16  ;;  %s850_s30 = sld [smem:[#allocation5 + $0x2]] }
  0x27   :  { %s125_s8 = scalar_lea.vmem %s1064_s4, %s850_s30 }
  0x28   :  { %v146_v2 = vld [vmem:[%s125_s8] sm:$0x1] }
  0x29   :  { %147 = vst [vmem:[#allocation2 + $0x2] sm:$0x1] %v146_v2 }
  0x2a   :  { %173 = vsyncadd [#allocation3 + $0x2], 16  ;;  %s851_s9 = sld [smem:[#allocation5 + $0x3]] }
  0x30   :  { %s176_s12 = scalar_lea.vmem %s1064_s4, %s851_s9 }
  0x31   :  { %v197_v3 = vld [vmem:[%s176_s12] sm:$0x1] }
  0x32   :  { %198 = vst [vmem:[#allocation2 + $0x3] sm:$0x1] %v197_v3 }
  0x33   :  { %224 = vsyncadd [#allocation3 + $0x3], 16  ;;  %s852_s13 = sld [smem:[#allocation5 + $0x4]] }
  0x39   :  { %s227_s16 = scalar_lea.vmem %s1064_s4, %s852_s13 }
  0x3a   :  { %v248_v4 = vld [vmem:[%s227_s16] sm:$0x1] }
  0x3b   :  { %249 = vst [vmem:[#allocation2 + $0x4] sm:$0x1] %v248_v4 }
  0x3c   :  { %275 = vsyncadd [#allocation3 + $0x4], 16  ;;  %s853_s17 = sld [smem:[#allocation5 + $0x5]] }
  0x42   :  { %s278_s20 = scalar_lea.vmem %s1064_s4, %s853_s17 }
  0x43   :  { %v299_v5 = vld [vmem:[%s278_s20] sm:$0x1] }
  0x44   :  { %300 = vst [vmem:[#allocation2 + $0x5] sm:$0x1] %v299_v5 }
  0x45   :  { %326 = vsyncadd [#allocation3 + $0x5], 16  ;;  %s854_s21 = sld [smem:[#allocation5 + $0x6]] }
  0x4b   :  { %s329_s24 = scalar_lea.vmem %s1064_s4, %s854_s21 }
  0x4c   :  { %v350_v6 = vld [vmem:[%s329_s24] sm:$0x1] }
  0x4d   :  { %351 = vst [vmem:[#allocation2 + $0x6] sm:$0x1] %v350_v6 }
  0x4e   :  { %377 = vsyncadd [#allocation3 + $0x6], 16  ;;  %s855_s25 = sld [smem:[#allocation5 + $0x7]] }
  0x54   :  { %s380_s27 = scalar_lea.vmem %s1064_s4, %s855_s25 }
  0x55   :  { %v401_v7 = vld [vmem:[%s380_s27] sm:$0x1] }
  0x56   :  { %402 = vst [vmem:[#allocation2 + $0x7] sm:$0x1] %v401_v7 }
  0x57   :  { %428 = vsyncadd [#allocation3 + $0x7], 16  ;;  %s971_s28 = smov 0  }
  0x58 LB: > { %s435_s29 = sand.u32 7, %s973_s28  ;;  %s973_s28 = sphi %s971_s28, %s434_s28  }
  0x59   : > { %s436_s30 = scalar_lea.sflag [#allocation3], %s435_s29 }
  0x5a   : > { %967 = dma.done.wait %s436_s30, 16 }
  0x5b   : > { %968 = vsyncadd %s436_s30, 4294967280  ;;  %s440_s6 = sadd.s32 8, %s973_s28 }
  0x5c   : > { %p856_p5 = scmp.ge.s32.totalorder %s440_s6, 72 }
  0x5d   : > { %s446_s7 = sld [smem:[#allocation5 + %s440_s6]] (!%p856_p5)  ;;  %s767_s11 = scalar_lea.vmem (!%p856_p5), [#allocation2], %s973_s28 }
  0x5e   : > { %444 = sbr.rel (%p856_p5) target bundleno = 103 (0x67), region = 264 }
  0x63   : > { %s447_s10 = scalar_lea.vmem %s1064_s4, %s446_s7 }
  0x64   : > { %v467_v8 = vld [vmem:[%s447_s10] sm:$0x1] }
  0x65   : > { %858 = vst [vmem:[%s767_s11 + $0x8] sm:$0x1] %v467_v8 }
  0x66   : > { %494 = vsyncadd %s436_s30, 16 }
  0x67 PF: > { %s434_s28 = sadd.s32 1, %s973_s28  }
  0x68   : > { %p431_p6 = scmp.ge.s32.totalorder %s434_s28, 72  }
  0x69   :  { %v976_v10 = vmov (%p431_p6), 0.0   ;;  %vm977_vm0 = vmmov (%p431_p6), 0   ;;  %v582_v13 = vld [vmem:[%s1062_s2 + $0x18] sm:$0xff] (%p431_p6)  ;;  %v581_v14 = vld [vmem:[%s1062_s2 + $0x10] sm:$0xff] (%p431_p6)  ;;  %v580_v16 = vld [vmem:[%s1062_s2 + $0x8] sm:$0xff] (%p431_p6)  ;;  %vm505_vm1 = vcmask (%p431_p6), 588800  }
  0x6a   :  { %433 = sbr.rel (!%p431_p6) target bundleno = 88 (0x58), region = 435  ;;  %885 = vmatprep.subr.mxu0 (%p431_p6), %v976_v10  ;;  %903 = vmatprep.mubr.msk.f32.mxu0 (%p431_p6), %vm977_vm0, %v976_v10  ;;  %v495_v22 = vld [vmem:[%s1061_s1] sm:$0xff] (%p431_p6)  ;;  %vm590_vm2 = vcmask (%p431_p6), 261120   ;;  %s978_s23 = smov (%p431_p6), [#allocation6]  }
  0x6b   :  { %906 = vmatprep.subr.mxu1 (%p431_p6), %v976_v10  ;;  %914 = vmatprep.mubr.msk.f32.mxu1 (%p431_p6), %vm977_vm0, %v976_v10  ;;  %v579_v23 = vld [vmem:[%s1062_s2] sm:$0xff] (%p431_p6)  ;;  %s671_s24 = sshll.u32 (%p431_p6), %s978_s23, 4  ;;  %s672_s24 = int_to_ptr.vmem [resolvable:$true] %s671_s24 }
  0x6c   :  { %v504_v9 = vld [vmem:[#allocation2 + $0x40] sm:$0xff] (%p431_p6)  ;;  %v503_v11 = vld [vmem:[#allocation2 + $0x38] sm:$0xff] (%p431_p6)  ;;  %v502_v12 = vld [vmem:[#allocation2 + $0x30] sm:$0xff] (%p431_p6)  ;;  %907 = vmatpush3.msra.mxu1 (%p431_p6), %v582_v13  ;;  %s941_s1 = scalar_lea.vmem (%p431_p6), %s672_s24, 128  ;;  %p946_p8 = scmp.lt.s32.totalorder (%p431_p6), %s672_s24, %s672_s24 }
  0x6d   :  { %886 = vmatpush3.msra.mxu0 (%p431_p6), %v504_v9  ;;  %v501_v15 = vld [vmem:[#allocation2 + $0x28] sm:$0xff] (%p431_p6)  ;;  %908 = vmatprep.subr.mxu1 (%p431_p6), %v976_v10  ;;  %v500_v17 = vld [vmem:[#allocation2 + $0x20] sm:$0xff] (%p431_p6)  ;;  %v499_v18 = vld [vmem:[#allocation2 + $0x18] sm:$0xff] (%p431_p6)  ;;  %p942_p7 = scmp.ne.s32.totalorder (%p431_p6), %s672_s24, %s941_s1  ;;  %p947_p9 = scmp.lt.s32.totalorder (%p431_p6), %s941_s1, %s941_s1 }
  0x6e   :  { %887 = vmatprep.subr.mxu0 (%p431_p6), %v976_v10  ;;  %909 = vmatpush3.msra.mxu1 (%p431_p6), %v581_v14  ;;  %v498_v19 = vld [vmem:[#allocation2 + $0x10] sm:$0xff] (%p431_p6)  ;;  %v497_v20 = vld [vmem:[#allocation2 + $0x8] sm:$0xff] (%p431_p6)  ;;  %v496_v21 = vld [vmem:[#allocation2] sm:$0xff] (%p431_p6) }
  0x6f   :  { %888 = vmatpush3.msra.mxu0 %v503_v11  ;;  %910 = vmatprep.subr.mxu1 %v976_v10  ;;  %v860_v26 = vld [vmem:[%s1063_s3] ss:$0 sm:$0xff]  ;;  %p948_p10 = por %p947_p9, %p946_p8 }
  0x70   :  { %889 = vmatprep.subr.mxu0 %v976_v10  ;;  %911 = vmatpush3.msra.mxu1 %v580_v16 }
  0x71   :  { %890 = vmatpush3.msra.mxu0 %v502_v12  ;;  %912 = vmatprep.subr.mxu1 %v976_v10  ;;  %p949_p11 = pnand %p948_p10, %p942_p7 }
  0x72   :  { %891 = vmatprep.subr.mxu0 %v976_v10  ;;  %913 = vmatpush3.msra.mxu1 %v579_v23 }
  0x73   :  { %892 = vmatpush3.msra.mxu0 %v501_v15 }
  0x74   :  { %893 = vmatprep.subr.mxu0 %v976_v10 }
  0x75   :  { %894 = vmatpush3.msra.mxu0 %v500_v17 }
  0x76   :  { %895 = vmatprep.subr.mxu0 %v976_v10 }
  0x77   :  { %896 = vmatpush3.msra.mxu0 %v499_v18 }
  0x78   :  { %897 = vmatprep.subr.mxu0 %v976_v10 }
  0x79   :  { %898 = vmatpush3.msra.mxu0 %v498_v19 }
  0x7a   :  { %899 = vmatprep.subr.mxu0 %v976_v10 }
  0x7b   :  { %900 = vmatpush3.msra.mxu0 %v497_v20 }
  0x7c   :  { %901 = vmatprep.subr.mxu0 %v976_v10 }
  0x7d   :  { %902 = vmatpush3.msra.mxu0 %v496_v21 }
  0x7e   :  { %904 = vmatmul.mubr.msk.f32.vlgmr.msra.gmra.mxu0 %vm505_vm1, %v495_v22 }
 0x13e   :  { %v575_v24 = vpop.f32.mrf.mxu0 }
 0x13f   :  { %915 = vmatmul.mubr.msk.f32.vlgmr.msra.gmra.mxu1 %vm590_vm2, %v575_v24 }
 0x140   :  { %v905_v25 = vpop.f32.mrf.mxu0 }
 0x1ff   :  { %v660_v27 = vpop.f32.mrf.mxu1 }
 0x200   :  { %v661_v28 = vadd.f32 %v860_v26, %v660_v27 }
 0x201   :  { %v916_v29 = vpop.f32.mrf.mxu1 }
 0x202   :  { %664 = vst [vmem:[#allocation6] sm:$0xff] %v661_v28 }
 0x203   :  { %952 = shalt.err (!%p949_p11)
}
 0x204   :  { %674 = dma.vmem_to_hbm [thread:$0]  %s672_s24, 128, %s1065_s5, [#allocation7]  }
 0x205   :  { %969 = dma.done.wait [#allocation7], 128  }
 0x206   :  { %970 = vsyncadd [#allocation7], 4294967168 }
 0x207   :  { %678 = vsyncpa [#allocation7], 1 }
 0x208   :  { %679 = vsyncmov [#allocation3] }
 0x20b   :  { %s680_s3 = vpop.sfrf %679 }
 0x20c   :  { %p862_p12 = scmp.ne.s32.totalorder %s680_s3, 0 }
 0x20e   :  { %684 = shalt.err (%p862_p12)  }
 0x20f   :  { %686 = vsyncmov [#allocation3 + $0x1] }
 0x212   :  { %s687_s26 = vpop.sfrf %686 }
 0x213   :  { %p863_p13 = scmp.ne.s32.totalorder %s687_s26, 0 }
 0x215   :  { %691 = shalt.err (%p863_p13)  }
 0x216   :  { %693 = vsyncmov [#allocation3 + $0x2] }
 0x219   :  { %s694_s0 = vpop.sfrf %693 }
 0x21a   :  { %p864_p0 = scmp.ne.s32.totalorder %s694_s0, 0 }
 0x21c   :  { %698 = shalt.err (%p864_p0)  }
 0x21d   :  { %700 = vsyncmov [#allocation3 + $0x3] }
 0x220   :  { %s701_s27 = vpop.sfrf %700 }
 0x221   :  { %p865_p1 = scmp.ne.s32.totalorder %s701_s27, 0 }
 0x223   :  { %705 = shalt.err (%p865_p1)  }
 0x224   :  { %707 = vsyncmov [#allocation3 + $0x4] }
 0x227   :  { %s708_s5 = vpop.sfrf %707 }
 0x228   :  { %p866_p2 = scmp.ne.s32.totalorder %s708_s5, 0 }
 0x22a   :  { %712 = shalt.err (%p866_p2)  }
 0x22b   :  { %714 = vsyncmov [#allocation3 + $0x5] }
 0x22e   :  { %s715_s28 = vpop.sfrf %714 }
 0x22f   :  { %p867_p3 = scmp.ne.s32.totalorder %s715_s28, 0 }
 0x231   :  { %719 = shalt.err (%p867_p3)  }
 0x232   :  { %721 = vsyncmov [#allocation3 + $0x6] }
 0x235   :  { %s722_s29 = vpop.sfrf %721 }
 0x236   :  { %p868_p4 = scmp.ne.s32.totalorder %s722_s29, 0 }
 0x238   :  { %726 = shalt.err (%p868_p4)  }
 0x239   :  { %728 = vsyncmov [#allocation3 + $0x7] }
 0x23c   :  { %s729_s30 = vpop.sfrf %728 }
 0x23d   :  { %p869_p5 = scmp.ne.s32.totalorder %s729_s30, 0 }
 0x23f   :  { %733 = shalt.err (%p869_p5)  }

</bundles_post_ra>
